<compile_context>
chip_gen: v7x
topology: tpu7x:2x2x1
jax: 0.10.0
libtpu: 0.0.40
codegen_flags: <defaults>
</compile_context>

<pallas_src>
import numpy as np
import jax
import jax.numpy as jnp
from jax.experimental import pallas as pl
from jax.experimental.pallas import tpu as pltpu


def _round_up(n, m):
    return (n + m - 1) // m * m


def _cdiv(a, b):
    return (a + b - 1) // b


def _window_indicator(H, W, kh, kw, num_cols):
    """P[p, m] = 1 iff flattened pixel p lies in stride-1 sliding window m
    (row-major window order).  Columns >= Hp*Wp are zero padding (lane pad)."""
    Hp, Wp = H - kh + 1, W - kw + 1
    P = np.zeros((H * W, num_cols), dtype=np.float32)
    for i in range(Hp):
        for j in range(Wp):
            m = i * Wp + j
            for h in range(i, i + kh):
                P[h * W + j: h * W + j + kw, m] = 1.0
    return P


def _patchguard_kernel(x_ref, p_ref, out_ref):
    # x_ref: [TR, HW]   p_ref: [HW, Mp]   out_ref: [TR, 1] f32
    xc = jnp.maximum(x_ref[...], 0)                                   # clamp(min=0), VPU
    total = jnp.sum(xc.astype(jnp.float32), axis=-1, keepdims=True)   # [TR, 1], XLU reduce
    w = jnp.dot(xc, p_ref[...], preferred_element_type=jnp.float32)   # [TR, Mp], MXU
    # Zero-pad columns of P produce w == 0 <= any real window sum (xc >= 0),
    # so an unmasked lane max is exact.
    max_w = jnp.max(w, axis=-1, keepdims=True)                        # [TR, 1]
    out_ref[...] = (total - max_w).astype(out_ref.dtype)


def _choose_row_tile(R, HW, Mp, itemsize, max_row_tile):
    """Pick the per-step row tile TR (multiple of 8, or the full row extent)."""
    max_row_tile = max(8, (max_row_tile // 8) * 8)
    # Cap TR so (double-buffered x tile + P budget + out tile) stays within a
    # conservative budget that also fits v7x's 64 MiB physical VMEM.
    budget = 28 * 1024 * 1024
    p_bytes = 2 * HW * Mp * itemsize
    per_row = 2 * HW * itemsize + 2 * 4
    rows_fit = (budget - p_bytes) // per_row
    if rows_fit >= 8:
        max_row_tile = min(max_row_tile, (int(rows_fit) // 8) * 8)
    # else: feature map too large for the dense-P design; rely on vmem_limit.
    if R > max_row_tile:
        return max_row_tile                      # grid >= 2 automatically
    if R >= 1024:
        # Split a single fat block into 2 so the "parallel" grid axis can
        # shard across v7x's two TensorCores.
        return _round_up(_cdiv(R, 2), 8)
    return R                                     # single full-extent block


def patchguard_pooling_forward(x, mask_size, *, dtype=jnp.bfloat16,
                               max_row_tile=2048):
    """Equivalent of PatchGuardPooling(mask_size).forward(x) for NCHW x.

    dtype: matmul operand dtype.  bfloat16 (default) halves HBM traffic and is
    exact for P; pass jnp.float32 for a bit-exact match to the reference.
    """
    B, C, H, W = x.shape
    kh, kw = (mask_size, mask_size) if isinstance(mask_size, int) else tuple(mask_size)
    Hp, Wp = H - kh + 1, W - kw + 1
    assert Hp >= 1 and Wp >= 1, "mask_size larger than the feature map"
    M = Hp * Wp
    HW = H * W
    Mp = _round_up(M, 128)                       # lane-dense matmul N dim
    itemsize = jnp.dtype(dtype).itemsize

    P = jnp.asarray(_window_indicator(H, W, kh, kw, Mp), dtype=dtype)  # [HW, Mp]

    # Fold batch and channels onto the MXU row axis.  No jnp.pad: partial last
    # block is handled by the grid; tail rows are discarded below.
    R = B * C
    xf = x.reshape(R, HW).astype(dtype)

    TR = _choose_row_tile(R, HW, Mp, itemsize, max_row_tile)
    num_blocks = _cdiv(R, TR)

    vmem_need = (2 * TR * HW * itemsize          # double-buffered x tile
                 + 2 * HW * Mp * itemsize        # P (counted x2 conservatively)
                 + 2 * TR * 4                    # output tile
                 + (2 << 20))                    # compiler-scratch headroom
    vmem_limit = int(min(max(vmem_need, 32 * 1024 * 1024), 96 * 1024 * 1024))

    cost = pl.CostEstimate(
        flops=2 * R * HW * Mp,
        transcendentals=0,
        bytes_accessed=R * HW * itemsize + HW * Mp * itemsize + R * 4)

    logits = pl.pallas_call(
        _patchguard_kernel,
        out_shape=jax.ShapeDtypeStruct((R, 1), jnp.float32),
        grid_spec=pltpu.PrefetchScalarGridSpec(
            num_scalar_prefetch=0,
            grid=(num_blocks,),
            in_specs=[
                pl.BlockSpec((TR, HW), lambda r: (r, 0)),
                # P's block index never changes -> keep it resident,
                # single-buffered.
                pl.BlockSpec((HW, Mp), lambda r: (0, 0),
                             pipeline_mode=pl.Buffered(1)),
            ],
            out_specs=pl.BlockSpec((TR, 1), lambda r: (r, 0))),
        compiler_params=pltpu.CompilerParams(
            dimension_semantics=("parallel",),
            vmem_limit_bytes=vmem_limit),
        cost_estimate=cost,
    )(xf, P)

    logits = logits[:R, 0].reshape(B, C)                         # [B, C]
    # torch.argmax returns int64; int32 labels carry identical values.
    return jnp.argmax(logits, axis=1).astype(jnp.int32)


# ---------------- pure-numpy reference mirroring the PyTorch forward ----------------

def _ref_forward(x_np, mask_size):
    B, C, H, W = x_np.shape
    kh, kw = (mask_size, mask_size) if isinstance(mask_size, int) else tuple(mask_size)
    xc = np.maximum(x_np.astype(np.float64), 0.0)
    total = xc.sum(axis=(2, 3))                                  # [B, C]
    Hp, Wp = H - kh + 1, W - kw + 1
    ws = np.zeros((B, C, Hp, Wp), dtype=np.float64)
    for i in range(Hp):
        for j in range(Wp):
            ws[:, :, i, j] = xc[:, :, i:i + kh, j:j + kw].sum(axis=(2, 3))
    logits = total - ws.reshape(B, C, -1).max(axis=2)
    return logits.argmax(axis=1)


if __name__ == "__main__":
    B, C, H, W = 2, 4, 16, 16
    mask_size = (6, 6)

    key = jax.random.PRNGKey(0)
    x = jax.random.normal(key, (B, C, H, W), dtype=jnp.float32)

    # Default fast path (bf16 operands, f32 accumulation): compare against a
    # reference built from the same bf16-quantized input.
    pred_bf16 = jax.block_until_ready(patchguard_pooling_forward(x, mask_size))
    x_q = np.asarray(x.astype(jnp.bfloat16).astype(jnp.float32))
    ref_bf16 = _ref_forward(x_q, mask_size)
    if not np.array_equal(np.asarray(pred_bf16, dtype=np.int64), ref_bf16.astype(np.int64)):
        raise AssertionError(f"bf16 path mismatch: pallas={np.asarray(pred_bf16)} ref={ref_bf16}")

    # Bit-exact f32 path against the unquantized reference.
    pred_f32 = jax.block_until_ready(
        patchguard_pooling_forward(x, mask_size, dtype=jnp.float32))
    ref_f32 = _ref_forward(np.asarray(x), mask_size)
    if not np.array_equal(np.asarray(pred_f32, dtype=np.int64), ref_f32.astype(np.int64)):
        raise AssertionError(f"f32 path mismatch: pallas={np.asarray(pred_f32)} ref={ref_f32}")

    print("KERNEL_OK")
</pallas_src>

<mosaic_0001>
module attributes {stable_mosaic.version = 11 : i64} {
  func.func @_patchguard_kernel(%arg0: i32, %arg1: memref<8x256xbf16, #tpu.memory_space<vmem>>, %arg2: memref<256x128xbf16, #tpu.memory_space<vmem>>, %arg3: memref<8x1xf32, #tpu.memory_space<vmem>>) attributes {dimension_semantics = [#tpu.dimension_semantics<parallel>], iteration_bounds = array<i64: 1>, scalar_prefetch = 0 : i64, scratch_operands = 0 : i64, tpu.core_type = #tpu.core_type<tc>, window_params = [{transform_indices = @transform_0, window_bounds = array<i64: 8, 256>}, {pipeline_mode = #tpu.pipeline_mode<synchronous>, transform_indices = @transform_1, window_bounds = array<i64: 256, 128>}, {transform_indices = @transform_2, window_bounds = array<i64: 8, 1>}]} {
    %c0 = arith.constant 0 : index
    %c0_0 = arith.constant 0 : index
    %0 = vector.load %arg1[%c0, %c0_0] : memref<8x256xbf16, #tpu.memory_space<vmem>>, vector<8x256xbf16>
    %cst = arith.constant 0.000000e+00 : bf16
    %1 = vector.broadcast %cst : bf16 to vector<8x256xbf16>
    %2 = arith.maximumf %0, %1 : vector<8x256xbf16>
    %3 = arith.extf %2 : vector<8x256xbf16> to vector<8x256xf32>
    %cst_1 = arith.constant dense<0.000000e+00> : vector<8xf32>
    %4 = vector.multi_reduction <add>, %3, %cst_1 [1] : vector<8x256xf32> to vector<8xf32>
    %5 = vector.shape_cast %4 : vector<8xf32> to vector<8x1xf32>
    %c0_2 = arith.constant 0 : index
    %c0_3 = arith.constant 0 : index
    %6 = vector.load %arg2[%c0_2, %c0_3] : memref<256x128xbf16, #tpu.memory_space<vmem>>, vector<256x128xbf16>
    %cst_4 = arith.constant dense<0.000000e+00> : vector<8x128xf32>
    %7 = tpu.matmul %2, %6, %cst_4 {dimension_numbers = #tpu.dot_dimension_numbers<[1], [0], [0], [1], [0, 0, 1, 1], [], []>} : vector<8x256xbf16>, vector<256x128xbf16>, vector<8x128xf32> -> vector<8x128xf32>
    %cst_5 = arith.constant dense<0xFF800000> : vector<8xf32>
    %8 = vector.multi_reduction <maximumf>, %7, %cst_5 [1] : vector<8x128xf32> to vector<8xf32>
    %9 = vector.shape_cast %8 : vector<8xf32> to vector<8x1xf32>
    %10 = arith.subf %5, %9 : vector<8x1xf32>
    %c0_6 = arith.constant 0 : index
    %c0_7 = arith.constant 0 : index
    %11 = vector.load %arg3[%c0_6, %c0_7] : memref<8x1xf32, #tpu.memory_space<vmem>>, vector<8x1xf32>
    tpu.vector_store %arg3[%c0_6, %c0_7], %10 {strides = array<i32>} : memref<8x1xf32, #tpu.memory_space<vmem>>, vector<8x1xf32>,
    return
  }
  func.func @transform_0(%arg0: i32) -> (i32, i32) {
    %c0_i32 = arith.constant 0 : i32
    %c0_i32_0 = arith.constant 0 : i32
    return %arg0, %c0_i32 : i32, i32
  }
  func.func @transform_1(%arg0: i32) -> (i32, i32) {
    %c0_i32 = arith.constant 0 : i32
    %c0_i32_0 = arith.constant 0 : i32
    %c0_i32_1 = arith.constant 0 : i32
    return %c0_i32, %c0_i32_0 : i32, i32
  }
  func.func @transform_2(%arg0: i32) -> (i32, i32) {
    %c0_i32 = arith.constant 0 : i32
    %c0_i32_0 = arith.constant 0 : i32
    return %arg0, %c0_i32 : i32, i32
  }
}

</mosaic_0001>

<bundles_post_ra>
// kernel: tpu_custom_call.1
= control target key start
LH: loop header
LB: loop body
LE: loop exit
PB: predicated region body
PF: predicated region fallthrough
CT: control target
= control target key end

     0   :  { %7 = vsyncpa [#allocation3], 0  ;;  %s394_s0 = inlined_call_operand.hbm [shape: bf16[8,256], index: 0, kind: input, shape index: {}]   ;;  %s395_s1 = inlined_call_operand.hbm [shape: bf16[256,128], index: 1, kind: input, shape index: {}]   ;;  %s396_s2 = inlined_call_operand.vmem [shape: f32[8,1], index: 2, kind: output, shape index: {}]  }
   0x1   :  { %8 = vsyncpa [#allocation5], 0  ;;  %s340_s9 = smov [#allocation2]   ;;  %s341_s11 = smov [#allocation4]  }
   0x2   :  { %s15_s10 = sshll.u32 %s340_s9, 4  ;;  %s24_s12 = sshll.u32 %s341_s11, 4  ;;  %s16_s10 = int_to_ptr.vmem [resolvable:$true] %s15_s10  ;;  %s360_s12 = int_to_ptr.vmem [resolvable:$true] %s24_s12 }
   0x3   :  { %s292_s15 = scalar_lea.hbm %s394_s0, 128 }
   0x4   :  { %p293_p0 = scmp.ne.s32.totalorder %s394_s0, %s292_s15  ;;  %p296_p1 = scmp.lt.u32.totalorder %s292_s15, %s394_s0 }
   0x6   :  { %p298_p2 = pnand %p296_p1, %p293_p0 }
   0x8   :  { %301 = shalt.err (!%p298_p2)
}
   0x9   :  { %s302_s20 = scalar_lea.vmem %s16_s10, 128  ;;  %p307_p4 = scmp.lt.s32.totalorder %s16_s10, %s16_s10 }
   0xa   :  { %p303_p3 = scmp.ne.s32.totalorder %s16_s10, %s302_s20  ;;  %p308_p5 = scmp.lt.s32.totalorder %s302_s20, %s302_s20 }
   0xc   :  { %p309_p6 = por %p308_p5, %p307_p4 }
   0xe   :  { %p310_p7 = pnand %p309_p6, %p303_p3 }
  0x10   :  { %313 = shalt.err (!%p310_p7)
}
  0x11   :  { %18 = dma.hbm_to_vmem [thread:$0]  %s394_s0, 128, %s16_s10, [#allocation3]  }
  0x12   :  { %s314_s25 = scalar_lea.hbm %s395_s1, 2048 }
  0x13   :  { %p315_p8 = scmp.ne.s32.totalorder %s395_s1, %s314_s25  ;;  %p318_p9 = scmp.lt.u32.totalorder %s314_s25, %s395_s1 }
  0x15   :  { %p320_p10 = pnand %p318_p9, %p315_p8 }
  0x17   :  { %323 = shalt.err (!%p320_p10)
}
  0x18   :  { %s324_s30 = scalar_lea.vmem %s360_s12, 2048  ;;  %p329_p12 = scmp.lt.s32.totalorder %s360_s12, %s360_s12 }
  0x19   :  { %p325_p11 = scmp.ne.s32.totalorder %s360_s12, %s324_s30  ;;  %p330_p13 = scmp.lt.s32.totalorder %s324_s30, %s324_s30 }
  0x1b   :  { %p331_p0 = por %p330_p13, %p329_p12 }
  0x1d   :  { %p332_p1 = pnand %p331_p0, %p325_p11 }
  0x1f   :  { %335 = shalt.err (!%p332_p1)
}
  0x20   :  { %s342_s0 = smov 64   ;;  %s343_s3 = smov 4  }
  0x21   :  { %30 = dma.hbm_to_vmem [thread:$0]  %s395_s1, 2048, %s360_s12, [#allocation5], %s342_s0, %s342_s0, %s343_s3  }
  0x22   :  { %336 = dma.done.wait [#allocation3], 128  }
  0x23   :  { %337 = vsyncadd [#allocation3], 4294967168 }
  0x24   :  { %338 = dma.done.wait [#allocation5], 2048  }
  0x25   :  { %339 = vsyncadd [#allocation5], 4294965248  ;;  %v276_v0 = vld [vmem:[#allocation4 + $0x40] sm:$0xff]   ;;  %v278_v2 = vld [vmem:[#allocation4 + $0x48] sm:$0xff]   ;;  %v344_v12 = vmov 0   ;;  %vm223_vm0 = vcmask 7168  }
  0x26   :  { %v277_v1 = vld [vmem:[#allocation4] sm:$0xff]   ;;  %249 = vmatprep.subr.bf16.mxu0 %v276_v0  ;;  %v279_v3 = vld [vmem:[#allocation4 + $0x8] sm:$0xff]   ;;  %v280_v4 = vld [vmem:[#allocation4 + $0x50] sm:$0xff]  }
  0x27   :  { %250 = vmatpush3.bf16.msra.mxu0 %v277_v1  ;;  %v281_v5 = vld [vmem:[#allocation4 + $0x10] sm:$0xff]   ;;  %v282_v6 = vld [vmem:[#allocation4 + $0x58] sm:$0xff]   ;;  %v284_v8 = vld [vmem:[#allocation4 + $0x60] sm:$0xff]  }
  0x28   :  { %251 = vmatprep.subr.bf16.mxu0 %v278_v2  ;;  %v283_v7 = vld [vmem:[#allocation4 + $0x18] sm:$0xff]   ;;  %v285_v9 = vld [vmem:[#allocation4 + $0x20] sm:$0xff]   ;;  %v286_v10 = vld [vmem:[#allocation4 + $0x68] sm:$0xff]  }
  0x29   :  { %v38_v11 = vld [vmem:[#allocation2] sm:$0xff]  ;;  %v287_v14 = vld [vmem:[#allocation4 + $0x28] sm:$0xff]   ;;  %v288_v16 = vld [vmem:[#allocation4 + $0x70] sm:$0xff]  }
  0x2a   :  { %v39_v13 = vmax.bf16 %v344_v12, %v38_v11  ;;  %v289_v17 = vld [vmem:[#allocation4 + $0x30] sm:$0xff]   ;;  %v290_v18 = vld [vmem:[#allocation4 + $0x78] sm:$0xff]  }
  0x2b   :  { %252 = vmatpush3.bf16.msra.mxu0 %v279_v3  ;;  %v291_v19 = vld [vmem:[#allocation4 + $0x38] sm:$0xff]  }
  0x2c   :  { %253 = vmatprep.subr.bf16.mxu0 %v280_v4  ;;  %v232_v15 = vcombine.high %v39_v13, %v39_v13  ;;  %v231_v20 = vcombine.low %v39_v13, %v39_v13  ;;  %v40_v21 = vunpack.c.l.bf16 %v39_v13  ;;  %v41_v22 = vunpack.c.h.bf16 %v39_v13 }
  0x2e   :  { %212 = vmatprep.mubr.bf16.mxu0 %v232_v15  ;;  %v42_v23 = vadd.f32 %v41_v22, %v40_v21 }
  0x2f   :  { %254 = vmatpush3.bf16.msra.mxu0 %v281_v5 }
  0x30   :  { %255 = vmatprep.subr.bf16.mxu0 %v282_v6  ;;  %43 = vadd.xlane.f32.xlu0 %v42_v23 }
  0x33   :  { %256 = vmatpush3.bf16.msra.mxu0 %v283_v7 }
  0x34   :  { %257 = vmatprep.subr.bf16.mxu0 %v284_v8 }
  0x37   :  { %258 = vmatpush3.bf16.msra.mxu0 %v285_v9 }
  0x38   :  { %259 = vmatprep.subr.bf16.mxu0 %v286_v10 }
  0x3b   :  { %260 = vmatpush3.bf16.msra.mxu0 %v287_v14 }
  0x3c   :  { %261 = vmatprep.subr.bf16.mxu0 %v288_v16 }
  0x3f   :  { %262 = vmatpush3.bf16.msra.mxu0 %v289_v17 }
  0x40   :  { %263 = vmatprep.subr.bf16.mxu0 %v290_v18 }
  0x43   :  { %264 = vmatpush3.bf16.msra.mxu0 %v291_v19 }
  0x46   :  { %213 = vmatmul.mubr.bf16.vlgmr.msra.gmra.mrb[0].mxu0 %v231_v20 }
  0xbd   :  { %v44_v29 = vpop.xlane.xlu0 %43 }
 0x119   :  { %v265_v24 = vpop.f32.mrb[0].mxu0 }
 0x11a   :  { %v266_v25 = vpop.f32.mrb[1].mxu0 }
 0x11b   :  { %v267_v26 = vadd.f32 %v266_v25, %v265_v24  ;;  %v268_v27 = vpop.f32.mrb[2].mxu0 }
 0x11c   :  { %v269_v28 = vpop.f32.mrb[3].mxu0 }
 0x11d   :  { %220 = vmax.xlane.f32.xlu0 %v267_v26 }
 0x1aa   :  { %v221_v30 = vpop.xlane.xlu0 %220 }
 0x1ab   :  { %v222_v31 = vsub.f32 %v44_v29, %v221_v30 }
 0x1ad   :  { %224 = vst.msk [vmem:[%s396_s2] sm:$0xff] %vm223_vm0, %v222_v31 }
 0x1ae   :  { %229 = vsyncpa [#allocation3], 1 }
 0x1af   :  { %230 = vsyncpa [#allocation5], 1 }

</bundles_post_ra>
